<compile_context>
chip_gen: v5e
topology: v5e:2x2
jax: 0.10.0
libtpu: 0.0.40
codegen_flags: <defaults>
</compile_context>

<pallas_src>
import math
import functools

import jax
import jax.numpy as jnp
from jax.experimental import pallas as pl
from jax.experimental.pallas import tpu as pltpu

# make_actv('leaky_relu') -> nn.LeakyReLU(0.2): the kaiming init in the reference uses
# a=0.2 for leaky_relu, so 0.2 is the intended negative slope.
NEG_SLOPE = 0.2
NORM_EPS = 1e-12          # F.normalize default eps
N_LAYERS = 3              # FiLMGenerator default


def _cdiv(a, b):
    return (a + b - 1) // b


def _round_up(a, m):
    return _cdiv(a, m) * m


# =====================================  Pallas kernel  ==================================

def film_generator_kernel(x_ref, w1_ref, b1_ref, w2_ref, b2_ref, w3_ref, b3_ref,
                          wo_ref, bo_ref, out_ref):
    """Fused FiLMGenerator forward for one tile of rows.

    x_ref:  (tile, in_dim)     w*_ref: (in, out) (already transposed from torch layout)
    b*_ref: (1, out)           out_ref: (tile, 2*out_dim)  -- single lane-dense store
    """
    x = x_ref[...]

    # F.normalize(x, dim=-1): x / max(||x||_2, eps)  ==  x * rsqrt(max(sum(x^2), eps^2))
    sq = jnp.sum(x * x, axis=-1, keepdims=True)
    x = x * jax.lax.rsqrt(jnp.maximum(sq, NORM_EPS * NORM_EPS))

    def lrelu(h):
        # identical to leaky_relu for 0 < slope < 1; vmul+vmax instead of vcmp+vselect
        return jnp.maximum(h, NEG_SLOPE * h)

    h = lrelu(jnp.dot(x, w1_ref[...], preferred_element_type=jnp.float32) + b1_ref[...])
    h = lrelu(jnp.dot(h, w2_ref[...], preferred_element_type=jnp.float32) + b2_ref[...])
    h = lrelu(jnp.dot(h, w3_ref[...], preferred_element_type=jnp.float32) + b3_ref[...])

    # out_layer: actv='linear' -> identity.  One wide store; gamma/beta split happens
    # in the wrapper (free slice on the XLA side).
    out_ref[...] = jnp.dot(h, wo_ref[...], preferred_element_type=jnp.float32) + bo_ref[...]


# ======================================  wrapper  =======================================

def film_generator(x, params, out_dim, tile_cap=1024):
    """FiLMGenerator.forward.  params = (w1,b1,w2,b2,w3,b3,w_out,b_out) with weights in
    (in_dim, out_dim) layout and biases shaped (1, out_dim)."""
    w1, b1, w2, b2, w3, b3, wo, bo = params
    bs, in_dim = x.shape
    hid = w1.shape[1]
    two_out = 2 * out_dim

    # ---- padding-aware tile selection -------------------------------------------------
    # n_tiles: enough tiles so each tile <= tile_cap rows; force >= 2 tiles when there is
    # real work (bs >= 16) so both v7x TensorCores get a grid step.
    n_tiles = max(_cdiv(bs, tile_cap), 2 if bs >= 16 else 1)
    bs_tile = _round_up(_cdiv(bs, n_tiles), 8)       # multiple of 8 (f32 sublane)
    bs_pad = n_tiles * bs_tile
    if bs_pad != bs:
        # zero rows normalize to zero and are sliced off below -> no NaNs, no aliasing
        x = jnp.pad(x, ((0, bs_pad - bs), (0, 0)))

    grid = (n_tiles,)
    const = lambda i: (0, 0)   # weights/biases: same block every grid step (DMA'd once)

    # ---- VMEM guardrail (matters on v7x: 64 MiB physical / 32 MiB scoped default) ------
    vmem_est = (
        2 * (bs_tile * in_dim + bs_tile * two_out) * 4            # double-buffered x/out
        + 2 * (in_dim * hid + 2 * hid * hid + hid * two_out       # weights (conservative)
               + 3 * hid + two_out) * 4                           # biases
    )
    cp_kwargs = dict(dimension_semantics=("parallel",))
    if vmem_est > (24 << 20):
        cp_kwargs["vmem_limit_bytes"] = int(vmem_est * 1.25)

    out = pl.pallas_call(
        film_generator_kernel,
        out_shape=jax.ShapeDtypeStruct((bs_pad, two_out), jnp.float32),
        grid=grid,
        in_specs=[
            pl.BlockSpec((bs_tile, in_dim), lambda i: (i, 0)),
            pl.BlockSpec((in_dim, hid), const),
            pl.BlockSpec((1, hid), const),
            pl.BlockSpec((hid, hid), const),
            pl.BlockSpec((1, hid), const),
            pl.BlockSpec((hid, hid), const),
            pl.BlockSpec((1, hid), const),
            pl.BlockSpec((hid, two_out), const),
            pl.BlockSpec((1, two_out), const),
        ],
        out_specs=pl.BlockSpec((bs_tile, two_out), lambda i: (i, 0)),
        compiler_params=pltpu.CompilerParams(**cp_kwargs),
    )(x, w1, b1, w2, b2, w3, b3, wo, bo)

    return out[:bs, :out_dim], out[:bs, out_dim:]


# =================================  parameter helpers  ==================================

def kaiming_normal(key, shape, a=0.0, nonlinearity='leaky_relu'):
    """torch.nn.init.kaiming_normal_(mode='fan_in') on a weight stored as (in, out)."""
    fan_in = shape[0]
    if nonlinearity == 'leaky_relu':
        gain = math.sqrt(2.0 / (1.0 + a * a))
    elif nonlinearity == 'linear':
        gain = 1.0
    else:
        raise ValueError(nonlinearity)
    std = gain / math.sqrt(fan_in)
    return (jax.random.normal(key, shape) * std).astype(jnp.float32)


# =======================================  main  =========================================

if __name__ == "__main__":
    key = jax.random.PRNGKey(0)
    kx, kx2, k1, k2, k3, ko = jax.random.split(key, 6)

    in_dim, hid_dim, out_dim = 16, 32, 32

    # FiLMGenerator params: 3 kaiming(leaky_relu) hidden layers + kaiming(linear) out layer
    w1 = kaiming_normal(k1, (in_dim, hid_dim), a=NEG_SLOPE)
    b1 = jnp.zeros((1, hid_dim), jnp.float32)
    w2 = kaiming_normal(k2, (hid_dim, hid_dim), a=NEG_SLOPE)
    b2 = jnp.zeros((1, hid_dim), jnp.float32)
    w3 = kaiming_normal(k3, (hid_dim, hid_dim), a=NEG_SLOPE)
    b3 = jnp.zeros((1, hid_dim), jnp.float32)
    wo = kaiming_normal(ko, (hid_dim, 2 * out_dim), nonlinearity='linear')
    bo = jnp.zeros((1, 2 * out_dim), jnp.float32)
    params = (w1, b1, w2, b2, w3, b3, wo, bo)

    fwd = jax.jit(functools.partial(film_generator, out_dim=out_dim))

    # pure-JAX reference (mirrors the PyTorch forward) for a correctness check
    def ref(xr):
        xn = xr / jnp.maximum(jnp.linalg.norm(xr, axis=-1, keepdims=True), NORM_EPS)
        h = xn
        for w, b in ((w1, b1), (w2, b2), (w3, b3)):
            h = h @ w + b
            h = jnp.where(h >= 0.0, h, NEG_SLOPE * h)
        o = h @ wo + bo
        return o[:, :out_dim], o[:, out_dim:]

    # bs=6 exercises padding within a single tile; bs=20 exercises the >=2-tile split.
    for bs in (6, 20):
        x = jax.random.normal(kx if bs == 6 else kx2, (bs, in_dim), dtype=jnp.float32)
        gamma, beta = fwd(x, params)
        jax.block_until_ready((gamma, beta))

        g_ref, b_ref = ref(x)
        assert gamma.shape == (bs, out_dim) and beta.shape == (bs, out_dim)
        assert jnp.allclose(gamma, g_ref, atol=1e-5, rtol=1e-5)
        assert jnp.allclose(beta, b_ref, atol=1e-5, rtol=1e-5)

    print("KERNEL_OK")
</pallas_src>

<mosaic_0001>
module attributes {stable_mosaic.version = 11 : i64} {
  func.func @film_generator_kernel(%arg0: i32, %arg1: memref<8x16xf32, #tpu.memory_space<vmem>>, %arg2: memref<16x32xf32, #tpu.memory_space<vmem>>, %arg3: memref<1x32xf32, #tpu.memory_space<vmem>>, %arg4: memref<32x32xf32, #tpu.memory_space<vmem>>, %arg5: memref<1x32xf32, #tpu.memory_space<vmem>>, %arg6: memref<32x32xf32, #tpu.memory_space<vmem>>, %arg7: memref<1x32xf32, #tpu.memory_space<vmem>>, %arg8: memref<32x64xf32, #tpu.memory_space<vmem>>, %arg9: memref<1x64xf32, #tpu.memory_space<vmem>>, %arg10: memref<8x64xf32, #tpu.memory_space<vmem>>) attributes {dimension_semantics = [#tpu.dimension_semantics<parallel>], iteration_bounds = array<i64: 1>, scalar_prefetch = 0 : i64, scratch_operands = 0 : i64, tpu.core_type = #tpu.core_type<tc>, window_params = [{transform_indices = @transform_0, window_bounds = array<i64: 8, 16>}, {pipeline_mode = #tpu.pipeline_mode<synchronous>, transform_indices = @transform_1, window_bounds = array<i64: 16, 32>}, {pipeline_mode = #tpu.pipeline_mode<synchronous>, transform_indices = @transform_2, window_bounds = array<i64: 1, 32>}, {pipeline_mode = #tpu.pipeline_mode<synchronous>, transform_indices = @transform_3, window_bounds = array<i64: 32, 32>}, {pipeline_mode = #tpu.pipeline_mode<synchronous>, transform_indices = @transform_4, window_bounds = array<i64: 1, 32>}, {pipeline_mode = #tpu.pipeline_mode<synchronous>, transform_indices = @transform_5, window_bounds = array<i64: 32, 32>}, {pipeline_mode = #tpu.pipeline_mode<synchronous>, transform_indices = @transform_6, window_bounds = array<i64: 1, 32>}, {pipeline_mode = #tpu.pipeline_mode<synchronous>, transform_indices = @transform_7, window_bounds = array<i64: 32, 64>}, {pipeline_mode = #tpu.pipeline_mode<synchronous>, transform_indices = @transform_8, window_bounds = array<i64: 1, 64>}, {transform_indices = @transform_9, window_bounds = array<i64: 8, 64>}]} {
    %c0 = arith.constant 0 : index
    %c0_0 = arith.constant 0 : index
    %0 = vector.load %arg1[%c0, %c0_0] : memref<8x16xf32, #tpu.memory_space<vmem>>, vector<8x16xf32>
    %1 = arith.mulf %0, %0 : vector<8x16xf32>
    %cst = arith.constant dense<0.000000e+00> : vector<8xf32>
    %2 = vector.multi_reduction <add>, %1, %cst [1] : vector<8x16xf32> to vector<8xf32>
    %3 = vector.shape_cast %2 : vector<8xf32> to vector<8x1xf32>
    %cst_1 = arith.constant 1.000000e-24 : f32
    %4 = vector.broadcast %cst_1 : f32 to vector<8x1xf32>
    %5 = arith.maximumf %3, %4 : vector<8x1xf32>
    %6 = math.rsqrt %5 : vector<8x1xf32>
    %7 = vector.broadcast %6 : vector<8x1xf32> to vector<8x16xf32>
    %8 = arith.mulf %0, %7 : vector<8x16xf32>
    %c0_2 = arith.constant 0 : index
    %c0_3 = arith.constant 0 : index
    %9 = vector.load %arg2[%c0_2, %c0_3] : memref<16x32xf32, #tpu.memory_space<vmem>>, vector<16x32xf32>
    %cst_4 = arith.constant dense<0.000000e+00> : vector<8x32xf32>
    %10 = tpu.matmul %8, %9, %cst_4 {dimension_numbers = #tpu.dot_dimension_numbers<[1], [0], [0], [1], [0, 0, 1, 1], [], []>} : vector<8x16xf32>, vector<16x32xf32>, vector<8x32xf32> -> vector<8x32xf32>
    %c0_5 = arith.constant 0 : index
    %c0_6 = arith.constant 0 : index
    %11 = vector.load %arg3[%c0_5, %c0_6] : memref<1x32xf32, #tpu.memory_space<vmem>>, vector<1x32xf32>
    %12 = vector.broadcast %11 : vector<1x32xf32> to vector<8x32xf32>
    %13 = arith.addf %10, %12 : vector<8x32xf32>
    %cst_7 = arith.constant 2.000000e-01 : f32
    %14 = vector.broadcast %cst_7 : f32 to vector<8x32xf32>
    %15 = arith.mulf %14, %13 : vector<8x32xf32>
    %16 = arith.maximumf %13, %15 : vector<8x32xf32>
    %c0_8 = arith.constant 0 : index
    %c0_9 = arith.constant 0 : index
    %17 = vector.load %arg4[%c0_8, %c0_9] : memref<32x32xf32, #tpu.memory_space<vmem>>, vector<32x32xf32>
    %cst_10 = arith.constant dense<0.000000e+00> : vector<8x32xf32>
    %18 = tpu.matmul %16, %17, %cst_10 {dimension_numbers = #tpu.dot_dimension_numbers<[1], [0], [0], [1], [0, 0, 1, 1], [], []>} : vector<8x32xf32>, vector<32x32xf32>, vector<8x32xf32> -> vector<8x32xf32>
    %c0_11 = arith.constant 0 : index
    %c0_12 = arith.constant 0 : index
    %19 = vector.load %arg5[%c0_11, %c0_12] : memref<1x32xf32, #tpu.memory_space<vmem>>, vector<1x32xf32>
    %20 = vector.broadcast %19 : vector<1x32xf32> to vector<8x32xf32>
    %21 = arith.addf %18, %20 : vector<8x32xf32>
    %cst_13 = arith.constant 2.000000e-01 : f32
    %22 = vector.broadcast %cst_13 : f32 to vector<8x32xf32>
    %23 = arith.mulf %22, %21 : vector<8x32xf32>
    %24 = arith.maximumf %21, %23 : vector<8x32xf32>
    %c0_14 = arith.constant 0 : index
    %c0_15 = arith.constant 0 : index
    %25 = vector.load %arg6[%c0_14, %c0_15] : memref<32x32xf32, #tpu.memory_space<vmem>>, vector<32x32xf32>
    %cst_16 = arith.constant dense<0.000000e+00> : vector<8x32xf32>
    %26 = tpu.matmul %24, %25, %cst_16 {dimension_numbers = #tpu.dot_dimension_numbers<[1], [0], [0], [1], [0, 0, 1, 1], [], []>} : vector<8x32xf32>, vector<32x32xf32>, vector<8x32xf32> -> vector<8x32xf32>
    %c0_17 = arith.constant 0 : index
    %c0_18 = arith.constant 0 : index
    %27 = vector.load %arg7[%c0_17, %c0_18] : memref<1x32xf32, #tpu.memory_space<vmem>>, vector<1x32xf32>
    %28 = vector.broadcast %27 : vector<1x32xf32> to vector<8x32xf32>
    %29 = arith.addf %26, %28 : vector<8x32xf32>
    %cst_19 = arith.constant 2.000000e-01 : f32
    %30 = vector.broadcast %cst_19 : f32 to vector<8x32xf32>
    %31 = arith.mulf %30, %29 : vector<8x32xf32>
    %32 = arith.maximumf %29, %31 : vector<8x32xf32>
    %c0_20 = arith.constant 0 : index
    %c0_21 = arith.constant 0 : index
    %33 = vector.load %arg8[%c0_20, %c0_21] : memref<32x64xf32, #tpu.memory_space<vmem>>, vector<32x64xf32>
    %cst_22 = arith.constant dense<0.000000e+00> : vector<8x64xf32>
    %34 = tpu.matmul %32, %33, %cst_22 {dimension_numbers = #tpu.dot_dimension_numbers<[1], [0], [0], [1], [0, 0, 1, 1], [], []>} : vector<8x32xf32>, vector<32x64xf32>, vector<8x64xf32> -> vector<8x64xf32>
    %c0_23 = arith.constant 0 : index
    %c0_24 = arith.constant 0 : index
    %35 = vector.load %arg9[%c0_23, %c0_24] : memref<1x64xf32, #tpu.memory_space<vmem>>, vector<1x64xf32>
    %36 = vector.broadcast %35 : vector<1x64xf32> to vector<8x64xf32>
    %37 = arith.addf %34, %36 : vector<8x64xf32>
    %c0_25 = arith.constant 0 : index
    %c0_26 = arith.constant 0 : index
    %38 = vector.load %arg10[%c0_25, %c0_26] : memref<8x64xf32, #tpu.memory_space<vmem>>, vector<8x64xf32>
    tpu.vector_store %arg10[%c0_25, %c0_26], %37 {strides = array<i32>} : memref<8x64xf32, #tpu.memory_space<vmem>>, vector<8x64xf32>,
    return
  }
  func.func @transform_0(%arg0: i32) -> (i32, i32) {
    %c0_i32 = arith.constant 0 : i32
    %c0_i32_0 = arith.constant 0 : i32
    return %arg0, %c0_i32 : i32, i32
  }
  func.func @transform_1(%arg0: i32) -> (i32, i32) {
    %c0_i32 = arith.constant 0 : i32
    %c0_i32_0 = arith.constant 0 : i32
    %c0_i32_1 = arith.constant 0 : i32
    return %c0_i32, %c0_i32_0 : i32, i32
  }
  func.func @transform_2(%arg0: i32) -> (i32, i32) {
    %c0_i32 = arith.constant 0 : i32
    %c0_i32_0 = arith.constant 0 : i32
    %c0_i32_1 = arith.constant 0 : i32
    return %c0_i32, %c0_i32_0 : i32, i32
  }
  func.func @transform_3(%arg0: i32) -> (i32, i32) {
    %c0_i32 = arith.constant 0 : i32
    %c0_i32_0 = arith.constant 0 : i32
    %c0_i32_1 = arith.constant 0 : i32
    return %c0_i32, %c0_i32_0 : i32, i32
  }
  func.func @transform_4(%arg0: i32) -> (i32, i32) {
    %c0_i32 = arith.constant 0 : i32
    %c0_i32_0 = arith.constant 0 : i32
    %c0_i32_1 = arith.constant 0 : i32
    return %c0_i32, %c0_i32_0 : i32, i32
  }
  func.func @transform_5(%arg0: i32) -> (i32, i32) {
    %c0_i32 = arith.constant 0 : i32
    %c0_i32_0 = arith.constant 0 : i32
    %c0_i32_1 = arith.constant 0 : i32
    return %c0_i32, %c0_i32_0 : i32, i32
  }
  func.func @transform_6(%arg0: i32) -> (i32, i32) {
    %c0_i32 = arith.constant 0 : i32
    %c0_i32_0 = arith.constant 0 : i32
    %c0_i32_1 = arith.constant 0 : i32
    return %c0_i32, %c0_i32_0 : i32, i32
  }
  func.func @transform_7(%arg0: i32) -> (i32, i32) {
    %c0_i32 = arith.constant 0 : i32
    %c0_i32_0 = arith.constant 0 : i32
    %c0_i32_1 = arith.constant 0 : i32
    return %c0_i32, %c0_i32_0 : i32, i32
  }
  func.func @transform_8(%arg0: i32) -> (i32, i32) {
    %c0_i32 = arith.constant 0 : i32
    %c0_i32_0 = arith.constant 0 : i32
    %c0_i32_1 = arith.constant 0 : i32
    return %c0_i32, %c0_i32_0 : i32, i32
  }
  func.func @transform_9(%arg0: i32) -> (i32, i32) {
    %c0_i32 = arith.constant 0 : i32
    %c0_i32_0 = arith.constant 0 : i32
    return %arg0, %c0_i32 : i32, i32
  }
}

</mosaic_0001>

<bundles_post_ra>
// kernel: film_generator.1
= control target key start
LH: loop header
LB: loop body
LE: loop exit
PB: predicated region body
PF: predicated region fallthrough
CT: control target
= control target key end

     0   :  { %14 = vsyncpa [#allocation3], 0  ;;  %s418_s0 = inlined_call_operand.vmem [shape: f32[8,16], index: 0, kind: input, shape index: {}]   ;;  %s419_s1 = inlined_call_operand.vmem [shape: f32[16,32], index: 1, kind: input, shape index: {}]   ;;  %s420_s2 = inlined_call_operand.vmem [shape: f32[1,32], index: 2, kind: input, shape index: {}]   ;;  %s421_s3 = inlined_call_operand.hbm [shape: f32[32,32], index: 3, kind: input, shape index: {}]   ;;  %s422_s4 = inlined_call_operand.vmem [shape: f32[1,32], index: 4, kind: input, shape index: {}]   ;;  %s423_s5 = inlined_call_operand.hbm [shape: f32[32,32], index: 5, kind: input, shape index: {}]   ;;  %s424_s6 = inlined_call_operand.vmem [shape: f32[1,32], index: 6, kind: input, shape index: {}]   ;;  %s425_s7 = inlined_call_operand.hbm [shape: f32[32,64], index: 7, kind: input, shape index: {}]   ;;  %s426_s8 = inlined_call_operand.vmem [shape: f32[1,64], index: 8, kind: input, shape index: {}]   ;;  %s427_s9 = inlined_call_operand.vmem [shape: f32[8,64], index: 9, kind: output, shape index: {}]  }
   0x1   :  { %15 = vsyncpa [#allocation5], 0  ;;  %s41_s11 = sshll.u32 %s423_s5, 4  ;;  %s325_s12 = smov [#allocation4]   ;;  %s42_s11 = int_to_ptr.hbm [resolvable:$true] %s41_s11 }
   0x2   :  { %s43_s13 = sshll.u32 %s325_s12, 4  ;;  %s26_s16 = sshll.u32 %s421_s3, 4  ;;  %s44_s13 = int_to_ptr.vmem [resolvable:$true] %s43_s13  ;;  %s27_s16 = int_to_ptr.hbm [resolvable:$true] %s26_s16 }
   0x3   :  { %s326_s17 = smov 128   ;;  %s327_s18 = smov 8  }
   0x4   :  { %49 = dma.hbm_to_vmem [thread:$0]  %s42_s11, 512, %s44_s13, [#allocation5], %s326_s17, %s326_s17, %s327_s18  }
   0x5   :  { %s328_s19 = smov [#allocation2]   ;;  %s56_s23 = sshll.u32 %s425_s7, 4  ;;  %s57_s23 = int_to_ptr.hbm [resolvable:$true] %s56_s23 }
   0x6   :  { %s28_s20 = sshll.u32 %s328_s19, 4  ;;  %s329_s5 = smov [#allocation6]   ;;  %s29_s20 = int_to_ptr.vmem [resolvable:$true] %s28_s20 }
   0x7   :  { %34 = dma.hbm_to_vmem [thread:$0]  %s27_s16, 512, %s29_s20, [#allocation3], %s326_s17, %s326_s17, %s327_s18  }
   0x8   :  { %s58_s24 = sshll.u32 %s329_s5, 4  ;;  %s59_s24 = int_to_ptr.vmem [resolvable:$true] %s58_s24 }
   0x9   :  { %64 = dma.hbm_to_vmem [thread:$0]  %s57_s23, 512, %s59_s24, [#allocation5], %s326_s17, %s326_s17, %s327_s18  }
   0xa   :  { %321 = dma.done.wait [#allocation3], 512  }
   0xb   :  { %322 = vsyncadd [#allocation3], 4294966784 }
   0xc   :  { %323 = dma.done.wait [#allocation5], 1024  }
   0xd   :  { %324 = vsyncadd [#allocation5], 4294966272  ;;  %v79_v0 = vld [vmem:[%s418_s0] sm:$0xff]  ;;  %vm81_vm0 = vcmask 130048   ;;  %v98_v3 = vld [vmem:[%s419_s1 + $0x8] sm:$0xff]  ;;  %vm136_vm4 = vcmask 261120  }
   0xe   :  { %v80_v1 = vmul.f32 %v79_v0, %v79_v0  ;;  %v97_v4 = vld [vmem:[%s419_s1] sm:$0xff]  ;;  %120 = vmatpush.msra.mxu0 %v98_v3  ;;  %v131_v15 = vld [vmem:[#allocation2 + $0x18] sm:$0xff]  ;;  %v130_v16 = vld [vmem:[#allocation2 + $0x10] sm:$0xff]  ;;  %vm226_vm5 = vcmask 523264  }
   0xf   :  { %152 = vmatpush.msra.mxu1 %v131_v15  ;;  %v129_v17 = vld [vmem:[#allocation2 + $0x8] sm:$0xff]  ;;  %v128_v18 = vld [vmem:[#allocation2] sm:$0xff]  ;;  %v165_v24 = vld [vmem:[#allocation4 + $0x18] sm:$0xff] }
  0x10   :  { %v82_v2 = vsel %vm81_vm0, %v80_v1, 0.0  ;;  %121 = vmatpush.msra.mxu0 %v97_v4  ;;  %v243_v19 = vld [vmem:[%s420_s2] ss:$0 sm:$0xff]  ;;  %185 = vmatpush.msra.mxu2 %v165_v24  ;;  %v164_v25 = vld [vmem:[#allocation4 + $0x10] sm:$0xff]  ;;  %v163_v26 = vld [vmem:[#allocation4 + $0x8] sm:$0xff] }
  0x11   :  { %83 = vadd.xlane.f32.xlu0 %v82_v2  ;;  %153 = vmatpush.msra.mxu1 %v130_v16  ;;  %v162_v27 = vld [vmem:[#allocation4] sm:$0xff]  ;;  %v198_v33 = vld [vmem:[#allocation6 + $0x18] sm:$0xff]  ;;  %v197_v34 = vld [vmem:[#allocation6 + $0x10] sm:$0xff] }
  0x12   :  { %186 = vmatpush.msra.mxu2 %v164_v25  ;;  %v244_v28 = vld [vmem:[%s422_s4] ss:$0 sm:$0xff]  ;;  %218 = vmatpush.msra.mxu3 %v198_v33  ;;  %v196_v35 = vld [vmem:[#allocation6 + $0x8] sm:$0xff] }
  0x13   :  { %154 = vmatpush.msra.mxu1 %v129_v17  ;;  %v195_v36 = vld [vmem:[#allocation6] sm:$0xff] }
  0x14   :  { %187 = vmatpush.msra.mxu2 %v163_v26  ;;  %219 = vmatpush.msra.mxu3 %v197_v34  ;;  %v245_v37 = vld [vmem:[%s424_s6] ss:$0 sm:$0xff] }
  0x15   :  { %155 = vmatpush.msra.mxu1 %v128_v18  ;;  %v246_v42 = vld [vmem:[%s426_s8] ss:$0 sm:$0xff] }
  0x16   :  { %188 = vmatpush.msra.mxu2 %v162_v27  ;;  %220 = vmatpush.msra.mxu3 %v196_v35 }
  0x18   :  { %221 = vmatpush.msra.mxu3 %v195_v36 }
  0x84   :  { %v84_v5 = vpop.xlane.xlu0 %83 }
  0x85   :  { %v85_v6 = vmax.f32 %v84_v5, 1e-24 }
  0x87   :  { %247 = vrsqrt.f32 %v85_v6  ;;  %vm92_vm2 = vweird.f32 %v85_v6 }
  0x8d   :  { %v248_v7 = vpop.eup %247 }
  0x8e   :  { %v87_v8 = vmul.f32 %v248_v7, %v85_v6  ;;  %vm93_vm1 = vweird.f32 %v248_v7 }
  0x8f   :  { %vm94_vm3 = vmor %vm92_vm2, %vm93_vm1 }
  0x90   :  { %v88_v9 = vmul.f32 %v248_v7, %v87_v8 }
  0x92   :  { %v89_v10 = vmul.f32 0.5, %v88_v9 }
  0x94   :  { %v90_v11 = vsub.f32 1.5, %v89_v10 }
  0x96   :  { %v91_v12 = vmul.f32 %v248_v7, %v90_v11 }
  0x98   :  { %v95_v13 = vsel %vm94_vm3, %v248_v7, %v91_v12 }
  0x99   :  { %v96_v14 = vmul.f32 %v95_v13, %v79_v0 }
  0x9b   :  { %234 = vmatmul.msk.f32.vlgmr.msra.gmra.mxu0 %vm81_vm0, %v96_v14 }
 0x118   :  { %v123_v20 = vpop.f32.mrf.mxu0 }
 0x119   :  { %v124_v21 = vadd.f32 %v243_v19, %v123_v20 }
 0x11b   :  { %v126_v22 = vmul.f32 0.2, %v124_v21 }
 0x11d   :  { %v127_v23 = vmax.f32 %v124_v21, %v126_v22 }
 0x11f   :  { %235 = vmatmul.msk.f32.vlgmr.msra.gmra.mxu1 %vm136_vm4, %v127_v23 }
 0x19c   :  { %v157_v29 = vpop.f32.mrf.mxu1 }
 0x19d   :  { %v158_v30 = vadd.f32 %v244_v28, %v157_v29 }
 0x19f   :  { %v160_v31 = vmul.f32 0.2, %v158_v30 }
 0x1a1   :  { %v161_v32 = vmax.f32 %v158_v30, %v160_v31 }
 0x1a3   :  { %236 = vmatmul.msk.f32.vlgmr.msra.gmra.mxu2 %vm136_vm4, %v161_v32 }
 0x226   :  { %v190_v38 = vpop.f32.mrf.mxu2 }
 0x227   :  { %v191_v39 = vadd.f32 %v245_v37, %v190_v38 }
 0x229   :  { %v193_v40 = vmul.f32 0.2, %v191_v39 }
 0x22b   :  { %v194_v41 = vmax.f32 %v191_v39, %v193_v40 }
 0x22d   :  { %237 = vmatmul.msk.f32.vlgmr.msra.gmra.mxu3 %vm136_vm4, %v194_v41 }
 0x2b0   :  { %v223_v43 = vpop.f32.mrf.mxu3 }
 0x2b1   :  { %v224_v44 = vadd.f32 %v246_v42, %v223_v43 }
 0x2b3   :  { %227 = vst.msk [vmem:[%s427_s9] sm:$0xff] %vm226_vm5, %v224_v44 }
 0x2b4   :  { %232 = vsyncpa [#allocation3], 1 }
 0x2b5   :  { %233 = vsyncpa [#allocation5], 1 }

</bundles_post_ra>
